<compile_context>
chip_gen: v7x
topology: tpu7x:2x2x1
jax: 0.10.0
libtpu: 0.0.40
codegen_flags: <defaults>
</compile_context>

<pallas_src>
import functools
import warnings

import jax
import jax.numpy as jnp
from jax.experimental import pallas as pl
from jax.experimental.pallas import tpu as pltpu

_LANES = 128
_TILE_ROWS = 512   # rows per grid step (multiple of 8); 512*128*4B = 256 KiB/input tile
_NSPLIT = 2        # leading parallel axis (v7x has 2 TensorCores; no-op elsewhere)


def _is_small_int_exponent(exponent):
    e = float(exponent)
    return e.is_integer() and 1.0 <= e <= 16.0


def _abs_pow(err, exponent):
    """|err| ** exponent, with an exact VPU-only fast path for small integer exponents."""
    if _is_small_int_exponent(exponent):
        n = int(exponent)
        if n % 2 == 0:
            sq = err * err                    # == |err|**2 exactly
            out = sq
            for _ in range(n // 2 - 1):
                out = out * sq
            return out
        a = jnp.abs(err)
        out = a
        for _ in range(n - 1):
            out = out * a
        return out
    # General (possibly non-integer) exponent: EUP exp/log path.
    return jnp.power(jnp.abs(err), jnp.float32(float(exponent)))


def _sum_abs_pow_kernel(o_ref, t_ref, partial_ref, acc_ref, *,
                        exponent, rows_total, steps_per_shard):
    """Accumulates sum(|target - output|**exponent) per shard over a (rows, 128) slab."""
    c = pl.program_id(0)   # shard (parallel axis)
    j = pl.program_id(1)   # step within shard (reduction axis)
    tile_rows = o_ref.shape[0]

    @pl.when(j == 0)
    def _():
        acc_ref[...] = jnp.zeros_like(acc_ref)

    err = t_ref[...].astype(jnp.float32) - o_ref[...].astype(jnp.float32)
    p = _abs_pow(err, exponent)

    # Mask rows beyond the logical end of the slab (ragged last block and
    # clamped out-of-range blocks of the last shard).
    row_start = (c * steps_per_shard + j) * tile_rows
    row_ids = row_start + jax.lax.broadcasted_iota(jnp.int32, p.shape, 0)
    p = jnp.where(row_ids < rows_total, p, 0.0)

    acc_ref[...] += p   # pure VPU elementwise accumulate (hidden under DMA)

    @pl.when(j == pl.num_programs(1) - 1)
    def _():
        shard_sum = jnp.sum(acc_ref[...])                    # one XLU reduce per shard
        partial_ref[...] = jnp.broadcast_to(shard_sum, partial_ref.shape)


def _pallas_sum_abs_pow(o2d, t2d, exponent):
    """Sum of |t - o|**exponent over a lane-dense (rows, 128) slab via Pallas."""
    rows = o2d.shape[0]
    tile_rows = min(_TILE_ROWS, rows)          # full-array block if the slab is small
    total_steps = pl.cdiv(rows, tile_rows)
    nsplit = min(_NSPLIT, total_steps)
    steps_per_shard = pl.cdiv(total_steps, nsplit)
    last_block = total_steps - 1

    def in_map(c, j):
        # Clamp so the last shard's trailing (fully-masked) steps stay in bounds.
        return (jnp.minimum(c * steps_per_shard + j, last_block), 0)

    kernel = functools.partial(
        _sum_abs_pow_kernel,
        exponent=float(exponent),
        rows_total=rows,
        steps_per_shard=steps_per_shard,
    )

    n_elems = rows * _LANES
    itemsize = jnp.dtype(o2d.dtype).itemsize
    cost = pl.CostEstimate(
        flops=4 * n_elems,
        transcendentals=0 if _is_small_int_exponent(exponent) else 2 * n_elems,
        bytes_accessed=2 * n_elems * itemsize + nsplit * 8 * _LANES * 4,
    )

    partials = pl.pallas_call(
        kernel,
        out_shape=jax.ShapeDtypeStruct((nsplit, 8, _LANES), jnp.float32),
        grid_spec=pltpu.PrefetchScalarGridSpec(
            num_scalar_prefetch=0,
            grid=(nsplit, steps_per_shard),
            in_specs=[
                pl.BlockSpec((tile_rows, _LANES), in_map),
                pl.BlockSpec((tile_rows, _LANES), in_map),
            ],
            out_specs=pl.BlockSpec((1, 8, _LANES), lambda c, j: (c, 0, 0)),
            scratch_shapes=[pltpu.VMEM((tile_rows, _LANES), jnp.float32)],
        ),
        compiler_params=pltpu.CompilerParams(
            dimension_semantics=("parallel", "arbitrary"),
        ),
        cost_estimate=cost,
    )(o2d, t2d)

    # Every element of a shard's (8,128) block holds that shard's sum.
    return jnp.sum(partials[:, 0, 0])


def custom_mse_loss(output, target, exponent, reduction="mean"):
    """Pallas implementation of CustomMSELoss.forward."""
    assert output.shape == target.shape
    if reduction not in ("mean", "sum", "max"):
        warnings.warn("The value of self.reduction is not valid. Returning None.")
        return None

    n_total = output.size
    flat_o = output.reshape(-1)
    flat_t = target.reshape(-1)
    n_main = (n_total // _LANES) * _LANES

    total = jnp.float32(0.0)
    if n_main > 0:
        # Lane-dense slab in the native dtype: no pad, no upcast -> no extra
        # HBM copies for this memory-bound kernel.
        o2d = flat_o[:n_main].reshape(-1, _LANES)
        t2d = flat_t[:n_main].reshape(-1, _LANES)
        total = total + _pallas_sum_abs_pow(o2d, t2d, exponent)

    if n_main < n_total:
        # Ragged tail (< 128 elements): trivially cheap in plain JAX.
        tail_err = (flat_t[n_main:].astype(jnp.float32)
                    - flat_o[n_main:].astype(jnp.float32))
        total = total + jnp.sum(_abs_pow(tail_err, exponent))

    loss = total / jnp.float32(n_total)
    # PyTorch applies mean/sum/max to an already-scalar loss -> identity.
    return loss


if __name__ == "__main__":
    key = jax.random.PRNGKey(0)
    k1, k2 = jax.random.split(key)
    # Small NCHW-shaped tensors consistent with typical loss usage.
    shape = (2, 4, 16, 16)
    output = jax.random.normal(k1, shape, dtype=jnp.float32)
    target = jax.random.normal(k2, shape, dtype=jnp.float32)

    # Standard MSE exponent (exercises the exact err*err fast path).
    exponent = 2.0
    loss = custom_mse_loss(output, target, exponent, reduction="mean")
    loss = jax.block_until_ready(loss)
    ref = jnp.mean(jnp.abs(target - output) ** exponent)
    assert jnp.allclose(loss, ref, rtol=1e-5, atol=1e-6), (loss, ref)

    # Non-integer exponent exercises the general jnp.power path; 'sum' of an
    # already-scalar loss is the identity, so the reference is still the mean.
    loss15 = custom_mse_loss(output, target, 1.5, reduction="sum")
    loss15 = jax.block_until_ready(loss15)
    ref15 = jnp.mean(jnp.abs(target - output) ** 1.5)
    assert jnp.allclose(loss15, ref15, rtol=1e-3, atol=1e-5), (loss15, ref15)

    print("KERNEL_OK")
</pallas_src>

<mosaic_0001>
module attributes {stable_mosaic.version = 11 : i64} {
  func.func @_sum_abs_pow_kernel(%arg0: i32, %arg1: i32, %arg2: memref<16x128xf32, #tpu.memory_space<vmem>>, %arg3: memref<16x128xf32, #tpu.memory_space<vmem>>, %arg4: memref<1x8x128xf32, #tpu.memory_space<vmem>>, %arg5: memref<16x128xf32, #tpu.memory_space<vmem>>) attributes {dimension_semantics = [#tpu.dimension_semantics<parallel>, #tpu.dimension_semantics<arbitrary>], iteration_bounds = array<i64: 1, 1>, scalar_prefetch = 0 : i64, scratch_operands = 1 : i64, tpu.core_type = #tpu.core_type<tc>, window_params = [{transform_indices = @transform_0, window_bounds = array<i64: 16, 128>}, {transform_indices = @transform_1, window_bounds = array<i64: 16, 128>}, {transform_indices = @transform_2, window_bounds = array<i64: 1, 8, 128>}]} {
    %c0_i32 = arith.constant 0 : i32
    %0 = arith.cmpi eq, %arg1, %c0_i32 : i32
    %1 = arith.extui %0 : i1 to i32
    %c0_i32_0 = arith.constant 0 : i32
    %2 = arith.cmpi ne, %1, %c0_i32_0 : i32
    scf.if %2 {
      %cst_11 = arith.constant 0.000000e+00 : f32
      %23 = vector.broadcast %cst_11 : f32 to vector<16x128xf32>
      %c0_12 = arith.constant 0 : index
      %c0_13 = arith.constant 0 : index
      %24 = vector.load %arg5[%c0_12, %c0_13] : memref<16x128xf32, #tpu.memory_space<vmem>>, vector<16x128xf32>
      tpu.vector_store %arg5[%c0_12, %c0_13], %23 {strides = array<i32>} : memref<16x128xf32, #tpu.memory_space<vmem>>, vector<16x128xf32>,
    } else {
    }
    %c0 = arith.constant 0 : index
    %c0_1 = arith.constant 0 : index
    %3 = vector.load %arg3[%c0, %c0_1] : memref<16x128xf32, #tpu.memory_space<vmem>>, vector<16x128xf32>
    %c0_2 = arith.constant 0 : index
    %c0_3 = arith.constant 0 : index
    %4 = vector.load %arg2[%c0_2, %c0_3] : memref<16x128xf32, #tpu.memory_space<vmem>>, vector<16x128xf32>
    %5 = arith.subf %3, %4 : vector<16x128xf32>
    %6 = arith.mulf %5, %5 : vector<16x128xf32>
    %c1_i32 = arith.constant 1 : i32
    %7 = arith.muli %arg0, %c1_i32 : i32
    %8 = arith.addi %7, %arg1 : i32
    %c16_i32 = arith.constant 16 : i32
    %9 = arith.muli %8, %c16_i32 : i32
    %10 = tpu.iota {dimensions = array<i32: 0>} : vector<16x128xi32>
    %11 = vector.broadcast %9 : i32 to vector<16x128xi32>
    %12 = arith.addi %11, %10 : vector<16x128xi32>
    %c16_i32_4 = arith.constant 16 : i32
    %13 = vector.broadcast %c16_i32_4 : i32 to vector<16x128xi32>
    %14 = arith.cmpi slt, %12, %13 : vector<16x128xi32>
    %cst = arith.constant 0.000000e+00 : f32
    %15 = vector.broadcast %cst : f32 to vector<16x128xf32>
    %16 = arith.select %14, %6, %15 : vector<16x128xi1>, vector<16x128xf32>
    %c0_5 = arith.constant 0 : index
    %c0_6 = arith.constant 0 : index
    %17 = vector.load %arg5[%c0_5, %c0_6] : memref<16x128xf32, #tpu.memory_space<vmem>>, vector<16x128xf32>
    %18 = arith.addf %17, %16 : vector<16x128xf32>
    %c0_7 = arith.constant 0 : index
    %c0_8 = arith.constant 0 : index
    %19 = vector.load %arg5[%c0_7, %c0_8] : memref<16x128xf32, #tpu.memory_space<vmem>>, vector<16x128xf32>
    tpu.vector_store %arg5[%c0_7, %c0_8], %18 {strides = array<i32>} : memref<16x128xf32, #tpu.memory_space<vmem>>, vector<16x128xf32>,
    %c0_i32_9 = arith.constant 0 : i32
    %20 = arith.cmpi eq, %arg1, %c0_i32_9 : i32
    %21 = arith.extui %20 : i1 to i32
    %c0_i32_10 = arith.constant 0 : i32
    %22 = arith.cmpi ne, %21, %c0_i32_10 : i32
    scf.if %22 {
      %c0_11 = arith.constant 0 : index
      %c0_12 = arith.constant 0 : index
      %23 = vector.load %arg5[%c0_11, %c0_12] : memref<16x128xf32, #tpu.memory_space<vmem>>, vector<16x128xf32>
      %24 = vector.shape_cast %23 : vector<16x128xf32> to vector<1x16x128xf32>
      %cst_13 = arith.constant dense<0.000000e+00> : vector<1xf32>
      %25 = vector.multi_reduction <add>, %24, %cst_13 [1, 2] : vector<1x16x128xf32> to vector<1xf32>
      %26 = vector.shape_cast %25 : vector<1xf32> to vector<1x1x1xf32>
      %27 = vector.extract %26[0, 0, 0] : f32 from vector<1x1x1xf32>
      %28 = vector.broadcast %27 : f32 to vector<1x8x128xf32>
      %c0_14 = arith.constant 0 : index
      %c0_15 = arith.constant 0 : index
      %c0_16 = arith.constant 0 : index
      %29 = vector.load %arg4[%c0_14, %c0_15, %c0_16] : memref<1x8x128xf32, #tpu.memory_space<vmem>>, vector<1x8x128xf32>
      tpu.vector_store %arg4[%c0_14, %c0_15, %c0_16], %28 {strides = array<i32>} : memref<1x8x128xf32, #tpu.memory_space<vmem>>, vector<1x8x128xf32>,
    } else {
    }
    return
  }
  func.func @transform_0(%arg0: i32, %arg1: i32) -> (i32, i32) {
    %c1_i32 = arith.constant 1 : i32
    %0 = arith.muli %arg0, %c1_i32 : i32
    %1 = arith.addi %0, %arg1 : i32
    %c0_i32 = arith.constant 0 : i32
    %2 = arith.minsi %1, %c0_i32 : i32
    %c0_i32_0 = arith.constant 0 : i32
    %c0_i32_1 = arith.constant 0 : i32
    return %2, %c0_i32_0 : i32, i32
  }
  func.func @transform_1(%arg0: i32, %arg1: i32) -> (i32, i32) {
    %c1_i32 = arith.constant 1 : i32
    %0 = arith.muli %arg0, %c1_i32 : i32
    %1 = arith.addi %0, %arg1 : i32
    %c0_i32 = arith.constant 0 : i32
    %2 = arith.minsi %1, %c0_i32 : i32
    %c0_i32_0 = arith.constant 0 : i32
    %c0_i32_1 = arith.constant 0 : i32
    return %2, %c0_i32_0 : i32, i32
  }
  func.func @transform_2(%arg0: i32, %arg1: i32) -> (i32, i32, i32) {
    %c0_i32 = arith.constant 0 : i32
    %c0_i32_0 = arith.constant 0 : i32
    %c0_i32_1 = arith.constant 0 : i32
    return %arg0, %c0_i32, %c0_i32_0 : i32, i32, i32
  }
}

</mosaic_0001>

<bundles_post_ra>
// kernel: tpu_custom_call.1
= control target key start
LH: loop header
LB: loop body
LE: loop exit
PB: predicated region body
PF: predicated region fallthrough
CT: control target
= control target key end

     0   :  { %7 = vsyncpa [#allocation4], 0  ;;  %s264_s0 = inlined_call_operand.hbm [shape: f32[16,128], index: 0, kind: input, shape index: {}]   ;;  %s265_s1 = inlined_call_operand.hbm [shape: f32[16,128], index: 1, kind: input, shape index: {}]   ;;  %s266_s2 = inlined_call_operand.hbm [shape: f32[1,8,128], index: 2, kind: output, shape index: {}]  }
   0x1   :  { %8 = vsyncpa [#allocation7], 0 }
   0x2   :  { %9 = vsyncpa [#allocation5], 0  ;;  %s208_s9 = smov [#allocation3]   ;;  %s136_s13 = scalar_lea.hbm %s264_s0, 256 }
   0x3   :  { %s21_s10 = sshll.u32 %s208_s9, 4  ;;  %p137_p0 = scmp.ne.s32.totalorder %s264_s0, %s136_s13  ;;  %s22_s10 = int_to_ptr.vmem [resolvable:$true] %s21_s10 }
   0x4   :  { %p140_p1 = scmp.lt.u32.totalorder %s136_s13, %s264_s0 }
   0x6   :  { %p142_p2 = pnand %p140_p1, %p137_p0 }
   0x8   :  { %145 = shalt.err (!%p142_p2)
}
   0x9   :  { %s146_s18 = scalar_lea.vmem %s22_s10, 256  ;;  %p151_p4 = scmp.lt.s32.totalorder %s22_s10, %s22_s10 }
   0xa   :  { %p147_p3 = scmp.ne.s32.totalorder %s22_s10, %s146_s18  ;;  %p152_p5 = scmp.lt.s32.totalorder %s146_s18, %s146_s18 }
   0xc   :  { %p153_p6 = por %p152_p5, %p151_p4 }
   0xe   :  { %p154_p7 = pnand %p153_p6, %p147_p3 }
  0x10   :  { %157 = shalt.err (!%p154_p7)
}
  0x11   :  { %s209_s19 = smov 128   ;;  %s210_s20 = smov 8  }
  0x12   :  { %27 = dma.hbm_to_vmem [thread:$0]  %s264_s0, 256, %s22_s10, [#allocation4], %s209_s19, %s209_s19, %s210_s20  }
  0x13   :  { %s211_s23 = smov [#allocation6]   ;;  %s158_s27 = scalar_lea.hbm %s265_s1, 256 }
  0x14   :  { %s39_s24 = sshll.u32 %s211_s23, 4  ;;  %p159_p8 = scmp.ne.s32.totalorder %s265_s1, %s158_s27  ;;  %s40_s24 = int_to_ptr.vmem [resolvable:$true] %s39_s24 }
  0x15   :  { %p162_p9 = scmp.lt.u32.totalorder %s158_s27, %s265_s1 }
  0x17   :  { %p164_p10 = pnand %p162_p9, %p159_p8 }
  0x19   :  { %167 = shalt.err (!%p164_p10)
}
  0x1a   :  { %s168_s4 = scalar_lea.vmem %s40_s24, 256  ;;  %p173_p12 = scmp.lt.s32.totalorder %s40_s24, %s40_s24 }
  0x1b   :  { %p169_p11 = scmp.ne.s32.totalorder %s40_s24, %s168_s4  ;;  %p174_p13 = scmp.lt.s32.totalorder %s168_s4, %s168_s4 }
  0x1d   :  { %p175_p0 = por %p174_p13, %p173_p12 }
  0x1f   :  { %p176_p1 = pnand %p175_p0, %p169_p11 }
  0x21   :  { %179 = shalt.err (!%p176_p1)
}
  0x22   :  { %45 = dma.hbm_to_vmem [thread:$0]  %s265_s1, 256, %s40_s24, [#allocation7], %s209_s19, %s209_s19, %s210_s20  }
  0x23   :  { %202 = dma.done.wait [#allocation4], 256  }
  0x24   :  { %203 = vsyncadd [#allocation4], 4294967040 }
  0x25   :  { %204 = dma.done.wait [#allocation7], 256  }
  0x26   :  { %205 = vsyncadd [#allocation7], 4294967040  ;;  %v66_v0 = vld [vmem:[#allocation6] sm:$0xff]  ;;  %v67_v1 = vld [vmem:[#allocation6 + $0x8] sm:$0xff]  ;;  %s212_s1 = smov [#allocation8]  }
  0x27   :  { %v68_v2 = vld [vmem:[#allocation3] sm:$0xff]  ;;  %v69_v3 = vld [vmem:[#allocation3 + $0x8] sm:$0xff]  ;;  %s115_s6 = sshll.u32 %s212_s1, 4  ;;  %s116_s6 = int_to_ptr.vmem [resolvable:$true] %s115_s6 }
  0x28   :  { %v70_v4 = vsub.f32 %v66_v0, %v68_v2  ;;  %v71_v5 = vsub.f32 %v67_v1, %v69_v3  ;;  %s180_s8 = scalar_lea.vmem %s116_s6, 128  ;;  %p185_p3 = scmp.lt.s32.totalorder %s116_s6, %s116_s6 }
  0x29   :  { %p181_p2 = scmp.ne.s32.totalorder %s116_s6, %s180_s8  ;;  %p186_p4 = scmp.lt.s32.totalorder %s180_s8, %s180_s8 }
  0x2a   :  { %v72_v6 = vmul.f32 %v70_v4, %v70_v4  ;;  %v73_v7 = vmul.f32 %v71_v5, %v71_v5 }
  0x2b   :  { %p187_p5 = por %p186_p4, %p185_p3 }
  0x2c   :  { %v97_v8 = vadd.f32 %v73_v7, %v72_v6 }
  0x2d   :  { %p188_p6 = pnand %p187_p5, %p181_p2 }
  0x2e   :  { %98 = vadd.xlane.f32.xlu0 %v97_v8 }
  0xbb   :  { %v99_v9 = vpop.xlane.xlu0 %98 }
  0xbc   :  { %v100_v10 = vrot.slane %v99_v9, 4 }
  0xbe   :  { %v101_v11 = vadd.f32 %v100_v10, %v99_v9 }
  0xc0   :  { %v102_v12 = vrot.slane %v101_v11, 2 }
  0xc2   :  { %v103_v13 = vadd.f32 %v102_v12, %v101_v11 }
  0xc4   :  { %v104_v14 = vrot.slane %v103_v13, 1 }
  0xc6   :  { %v105_v15 = vadd.f32 %v104_v14, %v103_v13 }
  0xc8   :  { %129 = vpush %v105_v15 }
  0xf9   :  { %s130_s7 = spop %129 }
  0xfa   :  { %v107_v16 = vstv %s130_s7 }
  0xfb   :  { %108 = vst [vmem:[#allocation8] sm:$0xff] %v107_v16 }
  0xfc   :  { %191 = shalt.err (!%p188_p6)
}
  0xfd   :  { %s192_s11 = scalar_lea.hbm %s266_s2, 128 }
  0xfe   :  { %p193_p7 = scmp.ne.s32.totalorder %s266_s2, %s192_s11  ;;  %p196_p8 = scmp.lt.u32.totalorder %s192_s11, %s266_s2 }
 0x100   :  { %p198_p9 = pnand %p196_p8, %p193_p7 }
 0x102   :  { %201 = shalt.err (!%p198_p9)
}
 0x103   :  { %118 = dma.vmem_to_hbm [thread:$0]  %s116_s6, 128, %s266_s2, [#allocation5]  }
 0x104   :  { %206 = dma.done.wait [#allocation5], 128  }
 0x105   :  { %207 = vsyncadd [#allocation5], 4294967168 }
 0x106   :  { %122 = vsyncpa [#allocation4], 1 }
 0x107   :  { %123 = vsyncpa [#allocation7], 1 }
 0x108   :  { %124 = vsyncpa [#allocation5], 1 }

</bundles_post_ra>
